<compile_context>
chip_gen: v7x
topology: tpu7x:2x2x1
jax: 0.10.0
libtpu: 0.0.40
codegen_flags: <defaults>
</compile_context>

<pallas_src>
import functools

import jax
import jax.numpy as jnp
from jax.experimental import pallas as pl
from jax.experimental.pallas import tpu as pltpu


def _round_up(x, m):
    return ((x + m - 1) // m) * m


def _head_kernel(x_ref, wt_ref, b_ref, o_ref):
    """One row-tile of the head.

    x_ref : (TM, HW)       -- flattened spatial features for TM (n, c) rows
    wt_ref: (1, NC_PAD)    -- weight row (cin == 1), lane-padded to 128
    b_ref : (1, NC_PAD)    -- bias, lane-padded to 128
    o_ref : (TM, NC_PAD)
    """
    inv_hw = jnp.float32(1.0 / x_ref.shape[-1])
    # Global average pool over the spatial (lane) axis -> (TM, 1).  Keep the
    # f32 cast: correct accumulation for bf16 inputs and required on v5e
    # (no bf16 VALU).
    pooled = jnp.sum(x_ref[...].astype(jnp.float32), axis=-1, keepdims=True) * inv_hw
    # Linear over the (size-1) trailing dim as a VPU broadcast multiply-add:
    # (TM, 1) * (1, NC_PAD) + (1, NC_PAD) -> (TM, NC_PAD).  No MXU for K=1.
    out = pooled * wt_ref[...].astype(jnp.float32) + b_ref[...].astype(jnp.float32)
    o_ref[...] = out.astype(o_ref.dtype)


@jax.jit
def network_head_forward(x, weight, bias):
    """x: (N, C, H, W) NCHW; weight: (num_class, cin); bias: (num_class,)."""
    N, C, H, W = x.shape
    num_class, cin = weight.shape
    assert cin == 1, (
        "Literal PyTorch semantics: fc is applied to the pooled tensor's "
        "trailing dim of size 1, so in_features (cin) must be 1."
    )

    M = N * C
    HW = H * W
    x2 = x.reshape(M, HW)  # rows = (n, c) pairs, lanes = flattened spatial

    # ---- Row-tile sizing: keep the double-buffered input tile <= ~8 MiB so it
    #      fits v5e's 16 MiB scoped-VMEM default and leaves headroom on v7x.
    itemsize = jnp.dtype(x.dtype).itemsize
    bytes_per_row = HW * itemsize
    budget = 8 * 1024 * 1024  # for 2 (double-buffer) x TM x HW x itemsize
    tm = budget // (2 * bytes_per_row)
    tm = max(8, min(512, (tm // 8) * 8))   # multiple of 8 sublanes, capped
    TM = min(tm, _round_up(M, 8))          # don't over-pad tiny problems

    # Pad rows so the grid covers every (n, c) pair (no silent tail drop).
    M_pad = _round_up(M, TM)
    if M_pad != M:
        x2 = jnp.pad(x2, ((0, M_pad - M), (0, 0)))

    # Lane-dense output: pad the class dim to a multiple of 128 (unmasked vst).
    NC_PAD = _round_up(num_class, 128)
    wt = jnp.zeros((1, NC_PAD), weight.dtype).at[0, :num_class].set(weight[:, 0])
    b2 = jnp.zeros((1, NC_PAD), bias.dtype).at[0, :num_class].set(bias)

    grid = (M_pad // TM,)

    out2 = pl.pallas_call(
        _head_kernel,
        out_shape=jax.ShapeDtypeStruct((M_pad, NC_PAD), x.dtype),
        grid_spec=pltpu.PrefetchScalarGridSpec(
            num_scalar_prefetch=0,
            grid=grid,
            in_specs=[
                pl.BlockSpec((TM, HW), lambda i: (i, 0)),
                pl.BlockSpec((1, NC_PAD), lambda i: (0, 0)),  # resident weight
                pl.BlockSpec((1, NC_PAD), lambda i: (0, 0)),  # resident bias
            ],
            out_specs=pl.BlockSpec((TM, NC_PAD), lambda i: (i, 0)),
        ),
        compiler_params=pltpu.CompilerParams(
            dimension_semantics=("parallel",),  # megacore shards row tiles on v7x
        ),
    )(x2, wt, b2)

    # Strip padding and return the PyTorch output layout: (N, C, 1, num_class).
    return out2[:M, :num_class].reshape(N, C, 1, num_class)


def _reference(x, weight, bias):
    """Pure-JAX reference of the literal PyTorch forward."""
    pooled = jnp.mean(x, axis=(2, 3), keepdims=True)           # (N, C, 1, 1)
    return jnp.einsum("nchk,jk->nchj", pooled, weight) + bias  # (N, C, 1, num_class)


if __name__ == "__main__":
    key = jax.random.PRNGKey(0)
    k_x, k_w, k_b = jax.random.split(key, 3)

    # Small shapes consistent with the module's forward.
    N, C, H, W = 2, 4, 16, 16
    cin, num_class = 1, 10

    x = jax.random.normal(k_x, (N, C, H, W), dtype=jnp.float32)
    # Deterministic init mimicking nn.Linear: U(-1/sqrt(cin), 1/sqrt(cin)).
    bound = 1.0 / (cin ** 0.5)
    weight = jax.random.uniform(k_w, (num_class, cin), jnp.float32, -bound, bound)
    bias = jax.random.uniform(k_b, (num_class,), jnp.float32, -bound, bound)

    out = network_head_forward(x, weight, bias)
    out = jax.block_until_ready(out)

    ref = _reference(x, weight, bias)
    assert out.shape == (N, C, 1, num_class), out.shape
    assert jnp.allclose(out, ref, atol=1e-5, rtol=1e-5), float(jnp.max(jnp.abs(out - ref)))

    print("KERNEL_OK")
</pallas_src>

<mosaic_0001>
module attributes {stable_mosaic.version = 11 : i64} {
  func.func @_head_kernel(%arg0: i32, %arg1: memref<8x256xf32, #tpu.memory_space<vmem>>, %arg2: memref<1x128xf32, #tpu.memory_space<vmem>>, %arg3: memref<1x128xf32, #tpu.memory_space<vmem>>, %arg4: memref<8x128xf32, #tpu.memory_space<vmem>>) attributes {dimension_semantics = [#tpu.dimension_semantics<parallel>], iteration_bounds = array<i64: 1>, scalar_prefetch = 0 : i64, scratch_operands = 0 : i64, tpu.core_type = #tpu.core_type<tc>, window_params = [{transform_indices = @transform_0, window_bounds = array<i64: 8, 256>}, {pipeline_mode = #tpu.pipeline_mode<synchronous>, transform_indices = @transform_1, window_bounds = array<i64: 1, 128>}, {pipeline_mode = #tpu.pipeline_mode<synchronous>, transform_indices = @transform_2, window_bounds = array<i64: 1, 128>}, {transform_indices = @transform_3, window_bounds = array<i64: 8, 128>}]} {
    %c0 = arith.constant 0 : index
    %c0_0 = arith.constant 0 : index
    %0 = vector.load %arg1[%c0, %c0_0] : memref<8x256xf32, #tpu.memory_space<vmem>>, vector<8x256xf32>
    %cst = arith.constant dense<0.000000e+00> : vector<8xf32>
    %1 = vector.multi_reduction <add>, %0, %cst [1] : vector<8x256xf32> to vector<8xf32>
    %2 = vector.shape_cast %1 : vector<8xf32> to vector<8x1xf32>
    %cst_1 = arith.constant 3.906250e-03 : f32
    %3 = vector.broadcast %cst_1 : f32 to vector<8x1xf32>
    %4 = arith.mulf %2, %3 : vector<8x1xf32>
    %c0_2 = arith.constant 0 : index
    %c0_3 = arith.constant 0 : index
    %5 = vector.load %arg2[%c0_2, %c0_3] : memref<1x128xf32, #tpu.memory_space<vmem>>, vector<1x128xf32>
    %6 = vector.broadcast %4 : vector<8x1xf32> to vector<8x128xf32>
    %7 = vector.broadcast %5 : vector<1x128xf32> to vector<8x128xf32>
    %8 = arith.mulf %6, %7 : vector<8x128xf32>
    %c0_4 = arith.constant 0 : index
    %c0_5 = arith.constant 0 : index
    %9 = vector.load %arg3[%c0_4, %c0_5] : memref<1x128xf32, #tpu.memory_space<vmem>>, vector<1x128xf32>
    %10 = vector.broadcast %9 : vector<1x128xf32> to vector<8x128xf32>
    %11 = arith.addf %8, %10 : vector<8x128xf32>
    %c0_6 = arith.constant 0 : index
    %c0_7 = arith.constant 0 : index
    %12 = vector.load %arg4[%c0_6, %c0_7] : memref<8x128xf32, #tpu.memory_space<vmem>>, vector<8x128xf32>
    tpu.vector_store %arg4[%c0_6, %c0_7], %11 {strides = array<i32>} : memref<8x128xf32, #tpu.memory_space<vmem>>, vector<8x128xf32>,
    return
  }
  func.func @transform_0(%arg0: i32) -> (i32, i32) {
    %c0_i32 = arith.constant 0 : i32
    %c0_i32_0 = arith.constant 0 : i32
    return %arg0, %c0_i32 : i32, i32
  }
  func.func @transform_1(%arg0: i32) -> (i32, i32) {
    %c0_i32 = arith.constant 0 : i32
    %c0_i32_0 = arith.constant 0 : i32
    %c0_i32_1 = arith.constant 0 : i32
    return %c0_i32, %c0_i32_0 : i32, i32
  }
  func.func @transform_2(%arg0: i32) -> (i32, i32) {
    %c0_i32 = arith.constant 0 : i32
    %c0_i32_0 = arith.constant 0 : i32
    %c0_i32_1 = arith.constant 0 : i32
    return %c0_i32, %c0_i32_0 : i32, i32
  }
  func.func @transform_3(%arg0: i32) -> (i32, i32) {
    %c0_i32 = arith.constant 0 : i32
    %c0_i32_0 = arith.constant 0 : i32
    return %arg0, %c0_i32 : i32, i32
  }
}

</mosaic_0001>

<bundles_post_ra>
// kernel: network_head_forward.1
= control target key start
LH: loop header
LB: loop body
LE: loop exit
PB: predicated region body
PF: predicated region fallthrough
CT: control target
= control target key end

     0   :  { %s124_s0 = inlined_call_operand.vmem [shape: f32[8,256], index: 0, kind: input, shape index: {}]   ;;  %s125_s1 = inlined_call_operand.vmem [shape: f32[1,128], index: 1, kind: input, shape index: {}]   ;;  %s126_s2 = inlined_call_operand.vmem [shape: f32[1,128], index: 2, kind: input, shape index: {}]   ;;  %s127_s3 = inlined_call_operand.hbm [shape: f32[8,128], index: 3, kind: output, shape index: {}]  }
   0x1   :  { %v15_v0 = vld [vmem:[%s124_s0] sm:$0xff]  ;;  %v16_v1 = vld [vmem:[%s124_s0 + $0x8] sm:$0xff] }
   0x2   :  { %8 = vsyncpa [#allocation3], 0  ;;  %v17_v2 = vadd.f32 %v16_v1, %v15_v0  ;;  %v52_v4 = vld [vmem:[%s125_s1] ss:$0 sm:$0xff]  ;;  %s79_s20 = smov [#allocation2]  }
   0x3   :  { %v53_v6 = vld [vmem:[%s126_s2] ss:$0 sm:$0xff]  ;;  %s44_s21 = sshll.u32 %s79_s20, 4  ;;  %s45_s21 = int_to_ptr.vmem [resolvable:$true] %s44_s21 }
   0x4   :  { %18 = vadd.xlane.f32.xlu0 %v17_v2  ;;  %s55_s0 = scalar_lea.vmem %s45_s21, 128  ;;  %p60_p1 = scmp.lt.s32.totalorder %s45_s21, %s45_s21 }
   0x5   :  { %p56_p0 = scmp.ne.s32.totalorder %s45_s21, %s55_s0  ;;  %p61_p2 = scmp.lt.s32.totalorder %s55_s0, %s55_s0 }
   0x7   :  { %p62_p3 = por %p61_p2, %p60_p1 }
   0x9   :  { %p63_p4 = pnand %p62_p3, %p56_p0 }
  0x91   :  { %v19_v3 = vpop.xlane.xlu0 %18 }
  0x92   :  { %v20_v5 = vmul.f32 0.00390625, %v19_v3 }
  0x94   :  { %v28_v7 = vmul.f32 %v52_v4, %v20_v5 }
  0x96   :  { %v36_v8 = vadd.f32 %v53_v6, %v28_v7 }
  0x98   :  { %37 = vst [vmem:[#allocation2] sm:$0xff] %v36_v8 }
  0x99   :  { %66 = shalt.err (!%p63_p4)
}
  0x9a   :  { %s67_s23 = scalar_lea.hbm %s127_s3, 128 }
  0x9b   :  { %p68_p5 = scmp.ne.s32.totalorder %s127_s3, %s67_s23  ;;  %p71_p6 = scmp.lt.u32.totalorder %s67_s23, %s127_s3 }
  0x9d   :  { %p73_p7 = pnand %p71_p6, %p68_p5 }
  0x9f   :  { %76 = shalt.err (!%p73_p7)
}
  0xa0   :  { %47 = dma.vmem_to_hbm [thread:$0]  %s45_s21, 128, %s127_s3, [#allocation3]  }
  0xa1   :  { %77 = dma.done.wait [#allocation3], 128  }
  0xa2   :  { %78 = vsyncadd [#allocation3], 4294967168 }
  0xa3   :  { %51 = vsyncpa [#allocation3], 1 }

</bundles_post_ra>
